<compile_context>
chip_gen: v7x
topology: tpu7x:2x2x1
jax: 0.10.0
libtpu: 0.0.40
codegen_flags: <defaults>
</compile_context>

<pallas_src>
import jax
import jax.numpy as jnp
from jax.experimental import pallas as pl
from jax.experimental.pallas import tpu as pltpu

LANE = 128


def _vmem_spec():
    return pl.BlockSpec(memory_space=pltpu.MemorySpace.VMEM)


# ---------------------------------------------------------------------------
# One fused kernel: two one-hot "gathers" on the MXU.  The encoder-layer chain
# and the final projection are already folded into the tables at init time.
# ---------------------------------------------------------------------------
def _fused_forward_kernel(src_ids_ref, tgt_ids_ref, enc_table_ref,
                          dec_table_ref, enc_out_ref, logits_ref):
    f32 = jnp.float32

    # encoder_embedding(src) -> encoder layers, all pre-folded into enc_table.
    s_src = src_ids_ref.shape[0]
    src_vocab = enc_table_ref.shape[0]
    src_oh = (jax.lax.broadcasted_iota(jnp.int32, (s_src, src_vocab), 1)
              == src_ids_ref[...]).astype(f32)
    enc_out_ref[...] = jnp.dot(src_oh, enc_table_ref[...],
                               preferred_element_type=f32)

    # decoder_embedding(tgt) -> (identity decoder) -> final_layer, pre-folded
    # into dec_table.
    s_tgt = tgt_ids_ref.shape[0]
    tgt_vocab = dec_table_ref.shape[0]
    tgt_oh = (jax.lax.broadcasted_iota(jnp.int32, (s_tgt, tgt_vocab), 1)
              == tgt_ids_ref[...]).astype(f32)
    logits_ref[...] = jnp.dot(tgt_oh, dec_table_ref[...],
                              preferred_element_type=f32)


def transformer_forward(params, src, tgt, *, embedding_dim, tgt_vocab):
    S_src = src.shape[0]
    S_tgt = tgt.shape[0]
    D_pad = params["enc_table_pad"].shape[1]
    V_pad = params["dec_table_pad"].shape[1]

    enc_out_pad, logits_pad = pl.pallas_call(
        _fused_forward_kernel,
        out_shape=(jax.ShapeDtypeStruct((S_src, D_pad), jnp.float32),
                   jax.ShapeDtypeStruct((S_tgt, V_pad), jnp.float32)),
        in_specs=[_vmem_spec()] * 4,
        out_specs=(_vmem_spec(), _vmem_spec()),
    )(src.reshape(S_src, 1).astype(jnp.int32),
      tgt.reshape(S_tgt, 1).astype(jnp.int32),
      params["enc_table_pad"], params["dec_table_pad"])

    return {"logits": logits_pad[:, :tgt_vocab],
            "encoder_output": enc_out_pad[:, :embedding_dim]}


# ---------------------------------------------------------------------------
# Deterministic parameter construction + algebraic folding.
# nn.Linear(x) = x @ W.T + b; weights are generated pre-transposed (fan_in,
# fan_out) so composition is plain right-multiplication.
# Attention / layer-norm parameters are NOT materialized: their result is
# discarded by the reference forward, so they affect no module output.
# ---------------------------------------------------------------------------
def _linear_params(key, fan_in, fan_out):
    kw, kb = jax.random.split(key)
    bound = 1.0 / (fan_in ** 0.5)
    w_t = jax.random.uniform(kw, (fan_in, fan_out), jnp.float32, -bound, bound)
    b = jax.random.uniform(kb, (1, fan_out), jnp.float32, -bound, bound)
    return w_t, b


def init_transformer_params(key, num_heads, src_vocab, tgt_vocab,
                            embedding_dim, num_layers, head_dim):
    del num_heads, head_dim  # attention params do not affect any output
    keys = jax.random.split(key, 3 + num_layers)

    enc_emb = jax.random.normal(keys[0], (src_vocab, embedding_dim), jnp.float32)
    dec_emb = jax.random.normal(keys[1], (tgt_vocab, embedding_dim), jnp.float32)

    # Fold the L bias-only ff layers into a single affine (W_comb, b_comb).
    w_comb = jnp.eye(embedding_dim, dtype=jnp.float32)
    b_comb = jnp.zeros((1, embedding_dim), jnp.float32)
    for l in range(num_layers):
        w_l, b_l = _linear_params(keys[3 + l], embedding_dim, embedding_dim)
        w_comb = w_comb @ w_l
        b_comb = b_comb @ w_l + b_l

    # Fold the encoder chain into the encoder embedding table, pad D -> 128.
    enc_table = enc_emb @ w_comb + b_comb                    # (src_vocab, D)
    d_pad = max(LANE, ((embedding_dim + LANE - 1) // LANE) * LANE)
    enc_table_pad = (jnp.zeros((src_vocab, d_pad), jnp.float32)
                     .at[:, :embedding_dim].set(enc_table))

    # Fold the final projection into the decoder embedding table, pad V -> 128.
    w_final, b_final = _linear_params(keys[2], embedding_dim, tgt_vocab)
    dec_table = dec_emb @ w_final + b_final                  # (tgt_vocab, V)
    v_pad = max(LANE, ((tgt_vocab + LANE - 1) // LANE) * LANE)
    dec_table_pad = (jnp.zeros((tgt_vocab, v_pad), jnp.float32)
                     .at[:, :tgt_vocab].set(dec_table))

    return {"enc_table_pad": enc_table_pad, "dec_table_pad": dec_table_pad}


if __name__ == "__main__":
    key = jax.random.PRNGKey(0)
    num_heads = 2
    src_vocab_size = 64
    tgt_vocab_size = 48
    embedding_dim = 32
    num_layers = 2
    attention_head_dim = 16
    S_src, S_tgt = 16, 8

    pkey, skey, tkey = jax.random.split(key, 3)
    params = init_transformer_params(pkey, num_heads, src_vocab_size,
                                     tgt_vocab_size, embedding_dim,
                                     num_layers, attention_head_dim)
    src = jax.random.randint(skey, (S_src,), 0, src_vocab_size, dtype=jnp.int32)
    tgt = jax.random.randint(tkey, (S_tgt,), 0, tgt_vocab_size, dtype=jnp.int32)

    outs = transformer_forward(params, src, tgt,
                               embedding_dim=embedding_dim,
                               tgt_vocab=tgt_vocab_size)
    outs = jax.block_until_ready(outs)

    assert outs["logits"].shape == (S_tgt, tgt_vocab_size)
    assert outs["logits"].dtype == jnp.float32
    assert outs["encoder_output"].shape == (S_src, embedding_dim)
    print("KERNEL_OK")
</pallas_src>

<mosaic_0001>
module attributes {stable_mosaic.version = 11 : i64} {
  func.func @_fused_forward_kernel(%arg0: memref<16x1xi32, #tpu.memory_space<vmem>>, %arg1: memref<8x1xi32, #tpu.memory_space<vmem>>, %arg2: memref<64x128xf32, #tpu.memory_space<vmem>>, %arg3: memref<48x128xf32, #tpu.memory_space<vmem>>, %arg4: memref<16x128xf32, #tpu.memory_space<vmem>>, %arg5: memref<8x128xf32, #tpu.memory_space<vmem>>) attributes {dimension_semantics = [], scalar_prefetch = 0 : i64, scratch_operands = 0 : i64, tpu.core_type = #tpu.core_type<tc>} {
    %0 = tpu.iota {dimensions = array<i32: 1>} : vector<16x64xi32>
    %c0 = arith.constant 0 : index
    %c0_0 = arith.constant 0 : index
    %1 = vector.load %arg0[%c0, %c0_0] : memref<16x1xi32, #tpu.memory_space<vmem>>, vector<16x1xi32>
    %2 = vector.broadcast %1 : vector<16x1xi32> to vector<16x64xi32>
    %3 = arith.cmpi eq, %0, %2 : vector<16x64xi32>
    %4 = arith.extui %3 : vector<16x64xi1> to vector<16x64xi32>
    %5 = arith.sitofp %4 : vector<16x64xi32> to vector<16x64xf32>
    %c0_1 = arith.constant 0 : index
    %c0_2 = arith.constant 0 : index
    %6 = vector.load %arg2[%c0_1, %c0_2] : memref<64x128xf32, #tpu.memory_space<vmem>>, vector<64x128xf32>
    %cst = arith.constant dense<0.000000e+00> : vector<16x128xf32>
    %7 = tpu.matmul %5, %6, %cst {dimension_numbers = #tpu.dot_dimension_numbers<[1], [0], [0], [1], [0, 0, 1, 1], [], []>} : vector<16x64xf32>, vector<64x128xf32>, vector<16x128xf32> -> vector<16x128xf32>
    %c0_3 = arith.constant 0 : index
    %c0_4 = arith.constant 0 : index
    %8 = vector.load %arg4[%c0_3, %c0_4] : memref<16x128xf32, #tpu.memory_space<vmem>>, vector<16x128xf32>
    tpu.vector_store %arg4[%c0_3, %c0_4], %7 {strides = array<i32>} : memref<16x128xf32, #tpu.memory_space<vmem>>, vector<16x128xf32>,
    %9 = tpu.iota {dimensions = array<i32: 1>} : vector<8x48xi32>
    %c0_5 = arith.constant 0 : index
    %c0_6 = arith.constant 0 : index
    %10 = vector.load %arg1[%c0_5, %c0_6] : memref<8x1xi32, #tpu.memory_space<vmem>>, vector<8x1xi32>
    %11 = vector.broadcast %10 : vector<8x1xi32> to vector<8x48xi32>
    %12 = arith.cmpi eq, %9, %11 : vector<8x48xi32>
    %13 = arith.extui %12 : vector<8x48xi1> to vector<8x48xi32>
    %14 = arith.sitofp %13 : vector<8x48xi32> to vector<8x48xf32>
    %c0_7 = arith.constant 0 : index
    %c0_8 = arith.constant 0 : index
    %15 = vector.load %arg3[%c0_7, %c0_8] : memref<48x128xf32, #tpu.memory_space<vmem>>, vector<48x128xf32>
    %cst_9 = arith.constant dense<0.000000e+00> : vector<8x128xf32>
    %16 = tpu.matmul %14, %15, %cst_9 {dimension_numbers = #tpu.dot_dimension_numbers<[1], [0], [0], [1], [0, 0, 1, 1], [], []>} : vector<8x48xf32>, vector<48x128xf32>, vector<8x128xf32> -> vector<8x128xf32>
    %c0_10 = arith.constant 0 : index
    %c0_11 = arith.constant 0 : index
    %17 = vector.load %arg5[%c0_10, %c0_11] : memref<8x128xf32, #tpu.memory_space<vmem>>, vector<8x128xf32>
    tpu.vector_store %arg5[%c0_10, %c0_11], %16 {strides = array<i32>} : memref<8x128xf32, #tpu.memory_space<vmem>>, vector<8x128xf32>,
    return
  }
}

</mosaic_0001>

<bundles_post_ra>
// kernel: tpu_custom_call.1
= control target key start
LH: loop header
LB: loop body
LE: loop exit
PB: predicated region body
PF: predicated region fallthrough
CT: control target
= control target key end

     0   :  { %11 = vsyncpa [#allocation3], 0  ;;  %s573_s0 = inlined_call_operand.vmem [shape: s32[16,1], index: 0, kind: input, shape index: {}]   ;;  %s574_s1 = inlined_call_operand.vmem [shape: s32[8,1], index: 1, kind: input, shape index: {}]   ;;  %s575_s2 = inlined_call_operand.hbm [shape: f32[64,128], index: 2, kind: input, shape index: {}]   ;;  %s576_s3 = inlined_call_operand.hbm [shape: f32[48,128], index: 3, kind: input, shape index: {}]   ;;  %s577_s4 = inlined_call_operand.hbm [shape: f32[16,128], index: 4, kind: output, shape index: {0}]   ;;  %s578_s5 = inlined_call_operand.hbm [shape: f32[8,128], index: 5, kind: output, shape index: {1}]  }
   0x1   :  { %12 = vsyncpa [#allocation6], 0 }
   0x2   :  { %13 = vsyncpa [#allocation4], 0 }
   0x3   :  { %14 = vsyncpa [#allocation9], 0  ;;  %s467_s18 = smov [#allocation2]   ;;  %s371_s22 = scalar_lea.hbm %s575_s2, 1024 }
   0x4   :  { %s24_s19 = sshll.u32 %s467_s18, 4  ;;  %p372_p0 = scmp.ne.s32.totalorder %s575_s2, %s371_s22  ;;  %s25_s19 = int_to_ptr.vmem [resolvable:$true] %s24_s19 }
   0x5   :  { %p375_p1 = scmp.lt.u32.totalorder %s371_s22, %s575_s2 }
   0x7   :  { %p377_p2 = pnand %p375_p1, %p372_p0 }
   0x9   :  { %380 = shalt.err (!%p377_p2)
}
   0xa   :  { %s381_s27 = scalar_lea.vmem %s25_s19, 1024  ;;  %p386_p4 = scmp.lt.s32.totalorder %s25_s19, %s25_s19 }
   0xb   :  { %p382_p3 = scmp.ne.s32.totalorder %s25_s19, %s381_s27  ;;  %p387_p5 = scmp.lt.s32.totalorder %s381_s27, %s381_s27 }
   0xd   :  { %p388_p6 = por %p387_p5, %p386_p4 }
   0xf   :  { %p389_p7 = pnand %p388_p6, %p382_p3 }
  0x11   :  { %392 = shalt.err (!%p389_p7)
}
  0x12   :  { %s468_s28 = smov 128   ;;  %s469_s29 = smov 8  }
  0x13   :  { %30 = dma.hbm_to_vmem [thread:$0]  %s575_s2, 1024, %s25_s19, [#allocation3], %s468_s28, %s468_s28, %s469_s29  }
  0x14   :  { %s470_s7 = smov [#allocation5]   ;;  %s393_s11 = scalar_lea.hbm %s576_s3, 768 }
  0x15   :  { %s36_s8 = sshll.u32 %s470_s7, 4  ;;  %p394_p8 = scmp.ne.s32.totalorder %s576_s3, %s393_s11  ;;  %s37_s8 = int_to_ptr.vmem [resolvable:$true] %s36_s8 }
  0x16   :  { %p397_p9 = scmp.lt.u32.totalorder %s393_s11, %s576_s3 }
  0x18   :  { %p399_p10 = pnand %p397_p9, %p394_p8 }
  0x1a   :  { %402 = shalt.err (!%p399_p10)
}
  0x1b   :  { %s403_s16 = scalar_lea.vmem %s37_s8, 768  ;;  %p408_p12 = scmp.lt.s32.totalorder %s37_s8, %s37_s8 }
  0x1c   :  { %p404_p11 = scmp.ne.s32.totalorder %s37_s8, %s403_s16  ;;  %p409_p13 = scmp.lt.s32.totalorder %s403_s16, %s403_s16 }
  0x1e   :  { %p410_p0 = por %p409_p13, %p408_p12 }
  0x20   :  { %p411_p1 = pnand %p410_p0, %p404_p11 }
  0x22   :  { %414 = shalt.err (!%p411_p1)
}
  0x23   :  { %42 = dma.hbm_to_vmem [thread:$0]  %s576_s3, 768, %s37_s8, [#allocation6], %s468_s28, %s468_s28, %s469_s29  }
  0x24   :  { %459 = dma.done.wait [#allocation3], 1024  }
  0x25   :  { %460 = vsyncadd [#allocation3], 4294966272 }
  0x26   :  { %461 = dma.done.wait [#allocation6], 768  }
  0x27   :  { %462 = vsyncadd [#allocation6], 4294966528  ;;  %v471_v0 = vmov 0   ;;  %v472_v1 = vmov 0.0|0.0   ;;  %v51_v2 = vld [vmem:[%s573_s0] sm:$0xff]  ;;  %v52_v4 = vld [vmem:[%s573_s0 + $0x8] sm:$0xff]  ;;  %v49_v27 = vlaneseq }
  0x28   :  { %369 = vset.pattern.permute.xlu0 %v471_v0  ;;  %370 = vset.pattern.permute.xlu1 %v471_v0  ;;  %v157_v3 = vld [vmem:[%s574_s1] sm:$0xff]  ;;  %v66_v6 = vld [vmem:[#allocation2 + $0x8] sm:$0xff]  ;;  %v67_v7 = vld [vmem:[#allocation2 + $0x10] sm:$0xff]  ;;  %vm473_vm0 = vmmov 0   ;;  %v474_v24 = vmov 0.0   ;;  %vm73_vm1 = vcmask 523264  }
  0x29   :  { %350 = vmatprep.subr.bf16.mxu1 %v472_v1  ;;  %54 = vperm.xlu0 %369, %v51_v2   ;;  %v65_v5 = vld [vmem:[#allocation2] sm:$0xff]  ;;  %v68_v9 = vld [vmem:[#allocation2 + $0x18] sm:$0xff]  ;;  %v165_v11 = vld [vmem:[#allocation5 + $0x8] sm:$0xff]  ;;  %v50_v28 = vand.u32 127, %v49_v27  ;;  %vm170_vm2 = vcmask 392192   ;;  %s475_s0 = smov [#allocation8]  }
  0x2a   :  { %159 = vperm.xlu1 %370, %v157_v3   ;;  %v334_v8 = vpack.c.bf16 %v66_v6, %v65_v5  ;;  %v164_v10 = vld [vmem:[#allocation5] sm:$0xff]  ;;  %v338_v12 = vpack.c.bf16 %v68_v9, %v67_v7  ;;  %v70_v15 = vld [vmem:[#allocation2 + $0x28] sm:$0xff]  ;;  %v166_v16 = vld [vmem:[#allocation5 + $0x10] sm:$0xff]  ;;  %331 = vmatprep.mubr.msk.f32.mxu1 %vm473_vm0, %v474_v24  ;;  %s263_s1 = sshll.u32 %s475_s0, 4  ;;  %s476_s3 = smov [#allocation7]   ;;  %s264_s1 = int_to_ptr.vmem [resolvable:$true] %s263_s1 }
  0x2b   :  { %v351_v13 = vpack.c.bf16 %v165_v11, %v164_v10  ;;  %v69_v14 = vld [vmem:[#allocation2 + $0x20] sm:$0xff]  ;;  %v167_v17 = vld [vmem:[#allocation5 + $0x18] sm:$0xff]  ;;  %v71_v20 = vld [vmem:[#allocation2 + $0x30] sm:$0xff]  ;;  %s250_s24 = sshll.u32 %s476_s3, 4  ;;  %s415_s25 = scalar_lea.vmem %s264_s1, 128  ;;  %s251_s24 = int_to_ptr.vmem [resolvable:$true] %s250_s24 }
  0x2c   :  { %335 = vmatprep.subr.bf16.mxu0 %v334_v8  ;;  %v342_v18 = vpack.c.bf16 %v70_v15, %v69_v14  ;;  %v354_v19 = vpack.c.bf16 %v167_v17, %v166_v16  ;;  %v72_v21 = vld [vmem:[#allocation2 + $0x38] sm:$0xff]  ;;  %v168_v22 = vld [vmem:[#allocation5 + $0x20] sm:$0xff]  ;;  %v169_v23 = vld [vmem:[#allocation5 + $0x28] sm:$0xff]  ;;  %p416_p2 = scmp.ne.s32.totalorder %s264_s1, %s415_s25  ;;  %p420_p3 = scmp.lt.s32.totalorder %s264_s1, %s264_s1 }
  0x2d   :  { %57 = vperm.xlu0 %369, %v52_v4   ;;  %337 = vmatpush3.bf16.msra.mxu0 %v334_v8  ;;  %v346_v25 = vpack.c.bf16 %v72_v21, %v71_v20  ;;  %v357_v26 = vpack.c.bf16 %v169_v23, %v168_v22  ;;  %p421_p4 = scmp.lt.s32.totalorder %s415_s25, %s415_s25 }
  0x2e   :  { %339 = vmatprep.subr.bf16.mxu0 %v338_v12  ;;  %352 = vmatpush3.bf16.msra.mxu1 %v351_v13 }
  0x2f   :  { %353 = vmatprep.subr.bf16.mxu1 %v472_v1  ;;  %p422_p5 = por %p421_p4, %p420_p3 }
  0x31   :  { %341 = vmatpush3.bf16.msra.mxu0 %v338_v12  ;;  %p423_p6 = pnand %p422_p5, %p416_p2 }
  0x32   :  { %343 = vmatprep.subr.bf16.mxu0 %v342_v18  ;;  %355 = vmatpush3.bf16.msra.mxu1 %v354_v19 }
  0x33   :  { %356 = vmatprep.subr.bf16.mxu1 %v472_v1 }
  0x35   :  { %345 = vmatpush3.bf16.msra.mxu0 %v342_v18 }
  0x36   :  { %347 = vmatprep.subr.bf16.mxu0 %v346_v25  ;;  %358 = vmatpush3.bf16.msra.mxu1 %v357_v26 }
  0x39   :  { %349 = vmatpush3.bf16.msra.mxu0 %v346_v25 }
  0xa8   :  { %v55_v29 = vpop.permute.xlu0 %54 }
  0xa9   :  { %v160_v30 = vpop.permute.xlu1 %159  ;;  %vm59_vm3 = vcmp.eq.s32.totalorder %v50_v28, %v55_v29 }
  0xaa   :  { %vm161_vm4 = vcmp.eq.s32.totalorder %v50_v28, %v160_v30  ;;  %v277_v31 = vsel %vm59_vm3, 1.0, %v474_v24 }
  0xab   :  { %v281_v32 = vsel %vm161_vm4, 1.0, %v474_v24  ;;  %316 = vmatprep.mubr.msk.f32.mxu0 %vm73_vm1, %v277_v31 }
  0xac   :  { %332 = vmatmul.mubr.msk.f32.vlgmr.msra.gmra.mrb[0].mxu1 %vm170_vm2, %v281_v32  ;;  %v58_v33 = vpop.permute.xlu0 %57 }
  0xad   :  { %vm60_vm5 = vcmp.eq.s32.totalorder %v50_v28, %v58_v33 }
  0xae   :  { %v278_v34 = vsel %vm60_vm5, 1.0, %v474_v24 }
  0xaf   :  { %317 = vmatmul.mubr.msk.f32.vlgmr.msra.gmra.mrb[0].mxu0 %vm73_vm1, %v278_v34 }
 0x17f   :  { %v240_v35 = vpop.f32.mrb[0].mxu1 }
 0x180   :  { %244 = vst [vmem:[#allocation8] sm:$0xff] %v240_v35  ;;  %v333_v36 = vpop.f32.mrb[1].mxu1 }
 0x181   :  { %426 = shalt.err (!%p423_p6)
}
 0x182   :  { %s427_s30 = scalar_lea.hbm %s578_s5, 128 }
 0x183   :  { %p428_p7 = scmp.ne.s32.totalorder %s578_s5, %s427_s30  ;;  %p431_p8 = scmp.lt.u32.totalorder %s427_s30, %s578_s5 }
 0x185   :  { %p433_p9 = pnand %p431_p8, %p428_p7 }
 0x187   :  { %436 = shalt.err (!%p433_p9)
}
 0x188   :  { %266 = dma.vmem_to_hbm [thread:$0]  %s264_s1, 128, %s578_s5, [#allocation9]   ;;  %v318_v37 = vpop.f32.mrb[0].mxu0 }
 0x189   :  { %156 = vst [vmem:[#allocation7 + $0x8] sm:$0xff] %v318_v37  ;;  %v146_v38 = vpop.f32.mrb[1].mxu0  ;;  %s437_s12 = scalar_lea.vmem %s251_s24, 256  ;;  %p442_p11 = scmp.lt.s32.totalorder %s251_s24, %s251_s24 }
 0x18a   :  { %155 = vst [vmem:[#allocation7] sm:$0xff] %v146_v38  ;;  %p438_p10 = scmp.ne.s32.totalorder %s251_s24, %s437_s12  ;;  %p443_p12 = scmp.lt.s32.totalorder %s437_s12, %s437_s12 }
 0x18c   :  { %p444_p13 = por %p443_p12, %p442_p11 }
 0x18e   :  { %p445_p0 = pnand %p444_p13, %p438_p10 }
 0x190   :  { %448 = shalt.err (!%p445_p0)
}
 0x191   :  { %s449_s15 = scalar_lea.hbm %s577_s4, 256 }
 0x192   :  { %p450_p1 = scmp.ne.s32.totalorder %s577_s4, %s449_s15  ;;  %p453_p2 = scmp.lt.u32.totalorder %s449_s15, %s577_s4 }
 0x194   :  { %p455_p3 = pnand %p453_p2, %p450_p1 }
 0x196   :  { %458 = shalt.err (!%p455_p3)
}
 0x197   :  { %256 = dma.vmem_to_hbm [thread:$0]  %s251_s24, 256, %s577_s4, [#allocation4], %s468_s28, %s468_s28, %s469_s29  }
 0x198   :  { %463 = dma.done.wait [#allocation4], 256  }
 0x199   :  { %464 = vsyncadd [#allocation4], 4294967040 }
 0x19a   :  { %465 = dma.done.wait [#allocation9], 128  }
 0x19b   :  { %466 = vsyncadd [#allocation9], 4294967168 }
 0x19c   :  { %273 = vsyncpa [#allocation3], 1 }
 0x19d   :  { %274 = vsyncpa [#allocation6], 1 }
 0x19e   :  { %275 = vsyncpa [#allocation4], 1 }
 0x19f   :  { %276 = vsyncpa [#allocation9], 1 }

</bundles_post_ra>
